<compile_context>
chip_gen: v6e
topology: v6e:2x2x1
jax: 0.10.0
libtpu: 0.0.40
codegen_flags: <defaults>
</compile_context>

<pallas_src>
import functools

import jax
import jax.numpy as jnp
from jax.experimental import pallas as pl
from jax.experimental.pallas import tpu as pltpu

_NEG_BIG = -1e30  # finite "minus infinity" (avoids inf-inf NaNs on padding)


def _round_up(x, m):
    return ((x + m - 1) // m) * m


def _choose_tile(total, quantum, cap):
    """Largest multiple of `quantum` dividing `total`, <= cap (>= quantum)."""
    best = quantum
    t = quantum
    limit = min(cap, total)
    while t <= limit:
        if total % t == 0:
            best = t
        t += quantum
    return best


@functools.lru_cache(maxsize=None)
def _tpu_generation():
    try:
        kind = jax.devices()[0].device_kind.lower()
    except Exception:
        return 0
    for g in (7, 6, 5, 4, 3):
        if (f"v{g}" in kind) or (f"tpu{g}" in kind):
            return g
    return 0


@functools.lru_cache(maxsize=None)
def _bf16_math_ok():
    """Probe whether bf16 transcendentals lower on this backend (v6e/v7x)."""
    if _tpu_generation() < 6:          # v5e and older: no bf16 VPU/EUP
        return False

    def _k(x_ref, o_ref):
        o_ref[...] = jnp.tanh(x_ref[...])

    try:
        x = jnp.zeros((8, 128), jnp.bfloat16)
        y = pl.pallas_call(
            _k, out_shape=jax.ShapeDtypeStruct((8, 128), jnp.bfloat16))(x)
        jax.block_until_ready(y)
        return True
    except Exception:
        return False


def _budgets():
    """(vmem_limit_bytes, pass1_block_bytes, pass2_block_bytes, t_c_cap)."""
    gen = _tpu_generation()
    mib = 1 << 20
    if gen >= 7:            # v7x: 64 MiB VMEM/TC, 2 TCs, ~3.2 TB/s HBM
        return 48 * mib, 2 * mib, 2 * mib, 4096
    if gen in (5, 6):       # v5e/v6e: 128 MiB VMEM
        return 80 * mib, 2 * mib, 4 * mib, 8192
    return 32 * mib, 1 * mib, 1 * mib, 2048   # unknown: conservative


# --------------------------------------------------------------------------
# Pass 1: spatial softmax pooling -> per-(batch, split) partials (m, l, ctx).
# --------------------------------------------------------------------------
def _pool_kernel(d_ref, wmask_ref, ctx_ref, l_ref, m_ref,
                 m_sc, l_sc, ctx_sc, *, hw, t_hw, n_tiles, needs_mask):
    s = pl.program_id(1)
    t = pl.program_id(2)

    @pl.when(t == 0)
    def _():
        m_sc[...] = jnp.full_like(m_sc, _NEG_BIG)
        l_sc[...] = jnp.zeros_like(l_sc)
        ctx_sc[...] = jnp.zeros_like(ctx_sc)

    d = d_ref[0].astype(jnp.float32)                 # (C, T) spatial chunk
    w = wmask_ref[...].astype(jnp.float32)           # (C, 1) conv_mask weight

    # 1x1 conv mask logits: VPU multiply + one sublane (XLU) reduce.
    lg = jnp.sum(d * w, axis=0, keepdims=True)       # (1, T)

    if needs_mask:
        base = (s * n_tiles + t) * t_hw
        pos = base + jax.lax.broadcasted_iota(jnp.int32, (1, t_hw), 1)
        valid = pos < hw
        lg = jnp.where(valid, lg, _NEG_BIG)

    # Lane-wide online softmax: everything below is elementwise (VPU/EUP);
    # no cross-lane reductions in the hot loop (feedback item #5).
    m_old = m_sc[...]
    m_new = jnp.maximum(m_old, lg)
    alpha = jnp.exp(m_old - m_new)
    e = jnp.exp(lg - m_new)
    if needs_mask:
        e = jnp.where(valid, e, 0.0)
    l_sc[...] = alpha * l_sc[...] + e
    ctx_sc[...] = alpha * ctx_sc[...] + d * e
    m_sc[...] = m_new

    @pl.when(t == pl.num_programs(2) - 1)
    def _():
        # Collapse the per-lane partials once per (batch, split).
        m_vec = m_sc[...]                                       # (1, T)
        m_g = jnp.max(m_vec, axis=-1, keepdims=True)            # (1, 1)
        scale = jnp.exp(m_vec - m_g)                            # (1, T)
        l_ref[0, 0] = jnp.sum(l_sc[...] * scale, axis=-1, keepdims=True)
        ctx_ref[0, 0] = jnp.sum(ctx_sc[...] * scale, axis=-1, keepdims=True)
        m_ref[0, 0] = m_g


# --------------------------------------------------------------------------
# Pass 2: elementwise gating, lane-dense over (B*C, HW) tiles.
# --------------------------------------------------------------------------
def _gating_kernel(x_ref, d_ref, ch_ref, o_ref, *, compute_dtype):
    xx = x_ref[...].astype(compute_dtype)     # (TR, TC)
    dd = d_ref[...].astype(compute_dtype)     # (TR, TC)
    ch = ch_ref[...].astype(compute_dtype)    # (TR, 1) per-row channel gate
    # sigmoid(z) == 0.5*tanh(0.5*z) + 0.5: one EUP push per sigmoid instead of
    # exp + divide (feedback item #3, keeps Pass 2 memory-bound on v7x).
    out1 = jnp.tanh((dd * ch) * 0.5) * 0.5 + 0.5
    out = jnp.tanh((xx * out1) * 0.5) * 0.5 + 0.5
    o_ref[...] = out.astype(o_ref.dtype)


def depth_attention_block(x, depth_feature, w_mask, w1, ln_gamma, ln_beta, w2,
                          *, eps=1e-5):
    """x, depth_feature: (B, C, H, W).  Returns (B, C, H, W) in x.dtype."""
    B, C, H, W = x.shape
    HW = H * W
    P = w1.shape[0]
    itemsize = x.dtype.itemsize
    vmem_limit, p1_blk, p2_blk, t_c_cap = _budgets()

    x2 = x.reshape(B, C, HW)
    d2 = depth_feature.reshape(B, C, HW)
    wmask_col = w_mask.reshape(C, 1).astype(jnp.float32)
    w1_2d = w1.reshape(P, C).astype(jnp.float32)
    w2_2d = w2.reshape(C, P).astype(jnp.float32)
    gamma = ln_gamma.reshape(P).astype(jnp.float32)
    beta = ln_beta.reshape(P).astype(jnp.float32)

    # Pad the spatial axis once to a lane multiple; both passes reuse it
    # (feedback item #2: no full-dim fallback, always lane-dense blocks).
    HW_pad = _round_up(HW, 128)
    if HW_pad != HW:
        pad = HW_pad - HW
        x2 = jnp.pad(x2, ((0, 0), (0, 0), (0, pad)))
        d2 = jnp.pad(d2, ((0, 0), (0, 0), (0, pad)))

    # ---------------- Pass 1: pooling partials ----------------
    c_sub = _round_up(C, 8)
    t_hw_cap = max(128, (p1_blk // (c_sub * itemsize)) // 128 * 128)
    t_hw = _choose_tile(HW_pad, 128, t_hw_cap)       # byte-budgeted tile (#1)
    n_tiles_total = HW_pad // t_hw
    nsplit = 2 if (n_tiles_total % 2 == 0 and n_tiles_total >= 2) else 1
    n_tiles = n_tiles_total // nsplit                # dual-TC split (#9)

    def d_index(b, s, t):
        return (b, 0, s * n_tiles + t)

    pool = functools.partial(_pool_kernel, hw=HW, t_hw=t_hw, n_tiles=n_tiles,
                             needs_mask=(HW_pad != HW))
    p1_cost = pl.CostEstimate(
        flops=int(8 * B * C * HW_pad),
        transcendentals=int(3 * B * HW_pad),
        bytes_accessed=int(B * C * HW_pad * itemsize))

    ctx_p, l_p, m_p = pl.pallas_call(
        pool,
        out_shape=(jax.ShapeDtypeStruct((B, nsplit, C, 1), jnp.float32),
                   jax.ShapeDtypeStruct((B, nsplit, 1, 1), jnp.float32),
                   jax.ShapeDtypeStruct((B, nsplit, 1, 1), jnp.float32)),
        grid=(B, nsplit, n_tiles),
        in_specs=[
            pl.BlockSpec((1, C, t_hw), d_index),            # depth feature
            pl.BlockSpec((C, 1), lambda b, s, t: (0, 0)),   # conv_mask weight
        ],
        out_specs=(
            pl.BlockSpec((1, 1, C, 1), lambda b, s, t: (b, s, 0, 0)),
            pl.BlockSpec((1, 1, 1, 1), lambda b, s, t: (b, s, 0, 0)),
            pl.BlockSpec((1, 1, 1, 1), lambda b, s, t: (b, s, 0, 0)),
        ),
        scratch_shapes=[
            pltpu.VMEM((1, t_hw), jnp.float32),   # running per-lane max
            pltpu.VMEM((1, t_hw), jnp.float32),   # running per-lane denom
            pltpu.VMEM((C, t_hw), jnp.float32),   # running per-lane context
        ],
        compiler_params=pltpu.CompilerParams(
            dimension_semantics=("parallel", "parallel", "arbitrary"),
            vmem_limit_bytes=vmem_limit),
        cost_estimate=p1_cost,
    )(d2, wmask_col)

    # -------- combine partials + channel MLP (tiny; plain JAX, item #10) ----
    m_p = m_p[:, :, 0, 0]                                     # (B, S)
    l_p = l_p[:, :, 0, 0]                                     # (B, S)
    ctx_p = ctx_p[:, :, :, 0]                                 # (B, S, C)
    m_g = jnp.max(m_p, axis=1, keepdims=True)
    wgt = jnp.exp(m_p - m_g)                                  # (B, S)
    denom = jnp.sum(l_p * wgt, axis=1, keepdims=True)         # (B, 1)
    ctx = jnp.sum(ctx_p * wgt[:, :, None], axis=1) / denom    # (B, C)

    h = ctx @ w1_2d.T                                         # (B, P)
    mu = jnp.mean(h, axis=-1, keepdims=True)
    var = jnp.mean((h - mu) ** 2, axis=-1, keepdims=True)
    hn = (h - mu) * jax.lax.rsqrt(var + eps) * gamma + beta
    hn = jnp.maximum(hn, 0.0)
    ch_gate = jax.nn.sigmoid(hn @ w2_2d.T)                    # (B, C) f32

    # ---------------- Pass 2: elementwise gating ----------------
    rows = B * C
    row_q = 8 * max(1, 4 // itemsize)          # 8 (f32) / 16 (bf16)
    rows_pad = _round_up(rows, row_q)
    xf = x2.reshape(rows, HW_pad)
    df = d2.reshape(rows, HW_pad)
    chf = ch_gate.reshape(rows, 1)
    if rows_pad != rows:
        xf = jnp.pad(xf, ((0, rows_pad - rows), (0, 0)))
        df = jnp.pad(df, ((0, rows_pad - rows), (0, 0)))
        chf = jnp.pad(chf, ((0, rows_pad - rows), (0, 0)))

    t_c = _choose_tile(HW_pad, 128, t_c_cap)
    t_r_cap = max(row_q, min(256, p2_blk // (t_c * itemsize)) // row_q * row_q)
    t_r = _choose_tile(rows_pad, row_q, t_r_cap)

    compute_dtype = (jnp.bfloat16
                     if (x.dtype == jnp.bfloat16 and _bf16_math_ok())
                     else jnp.float32)          # bf16 math on >=v6 (item #4)
    gate = functools.partial(_gating_kernel, compute_dtype=compute_dtype)

    padded = (HW_pad != HW) or (rows_pad != rows)
    p2_cost = pl.CostEstimate(
        flops=int(6 * rows_pad * HW_pad),
        transcendentals=int(2 * rows_pad * HW_pad),
        bytes_accessed=int(3 * rows_pad * HW_pad * itemsize))

    # TODO(synk): pipeline_mode=pl.Buffered(3) on the x/d specs is a potential
    # few-percent win on v6e; left at the default depth for portability.
    out = pl.pallas_call(
        gate,
        out_shape=jax.ShapeDtypeStruct((rows_pad, HW_pad), x.dtype),
        grid=(rows_pad // t_r, HW_pad // t_c),
        in_specs=[
            pl.BlockSpec((t_r, t_c), lambda r, s: (r, s)),   # x
            pl.BlockSpec((t_r, t_c), lambda r, s: (r, s)),   # depth
            pl.BlockSpec((t_r, 1), lambda r, s: (r, 0)),     # channel gate
        ],
        out_specs=pl.BlockSpec((t_r, t_c), lambda r, s: (r, s)),
        compiler_params=pltpu.CompilerParams(
            dimension_semantics=("parallel", "parallel"),
            vmem_limit_bytes=vmem_limit),
        cost_estimate=p2_cost,
        # The padded xf is a private copy of x, so it is safe to donate; this
        # avoids allocating a second full-size HBM buffer for the output.
        input_output_aliases=({0: 0} if padded else {}),
    )(xf, df, chf)

    out = out[:rows, :HW]
    return out.reshape(B, C, H, W)


# --------------------------------------------------------------------------
# Pure-JAX reference mirroring the PyTorch forward (NCHW).
# --------------------------------------------------------------------------
def _reference(x, depth, w_mask, w1, ln_gamma, ln_beta, w2, eps=1e-5):
    B, C, H, W = x.shape
    HW = H * W
    P = w1.shape[0]
    xf = x.astype(jnp.float32)
    d = depth.reshape(B, C, HW).astype(jnp.float32)
    logits = jnp.einsum("c,bcs->bs", w_mask.reshape(C).astype(jnp.float32), d)
    p = jax.nn.softmax(logits, axis=-1)                     # (B, HW)
    ctx = jnp.einsum("bcs,bs->bc", d, p)                    # (B, C)
    h = jnp.einsum("pc,bc->bp", w1.reshape(P, C), ctx)      # (B, P)
    mu = jnp.mean(h, axis=-1, keepdims=True)
    var = jnp.mean((h - mu) ** 2, axis=-1, keepdims=True)
    hn = (h - mu) / jnp.sqrt(var + eps)
    hn = hn * ln_gamma.reshape(P) + ln_beta.reshape(P)
    hn = jnp.maximum(hn, 0.0)
    t = jnp.einsum("cp,bp->bc", w2.reshape(C, P), hn)       # (B, C)
    ch = jax.nn.sigmoid(t)[:, :, None, None]
    out1 = jax.nn.sigmoid(depth.astype(jnp.float32) * ch)
    return jax.nn.sigmoid(xf * out1)


if __name__ == "__main__":
    def make_inputs(B, C, H, W, P, key):
        kx, kd, km, k1, k2, kg, kb = jax.random.split(key, 7)
        x = jax.random.normal(kx, (B, C, H, W), dtype=jnp.float32)
        depth = jax.random.normal(kd, (B, C, H, W), dtype=jnp.float32)
        w_mask = jax.random.normal(km, (1, C, 1, 1), dtype=jnp.float32) * 0.2
        w1 = jax.random.normal(k1, (P, C, 1, 1), dtype=jnp.float32) * 0.2
        w2 = jax.random.normal(k2, (C, P, 1, 1), dtype=jnp.float32) * 0.2
        ln_gamma = jnp.ones((P, 1, 1), jnp.float32) + \
            0.1 * jax.random.normal(kg, (P, 1, 1), dtype=jnp.float32)
        ln_beta = 0.1 * jax.random.normal(kb, (P, 1, 1), dtype=jnp.float32)
        return x, depth, w_mask, w1, ln_gamma, ln_beta, w2

    # 1) f32, lane-aligned shapes (B=2, C=4, 16x16 spatial, hidden=8).
    args = make_inputs(2, 4, 16, 16, 8, jax.random.PRNGKey(0))
    out = jax.block_until_ready(depth_attention_block(*args))
    ref = _reference(*args)
    assert out.shape == (2, 4, 16, 16)
    err = float(jnp.max(jnp.abs(out - ref)))
    assert jnp.allclose(out, ref, atol=2e-5, rtol=2e-5), f"f32 max err {err}"

    # 2) bf16 activations (Pass-2 math stays bf16 on >=v6, f32 otherwise).
    xb, db = args[0].astype(jnp.bfloat16), args[1].astype(jnp.bfloat16)
    outb = jax.block_until_ready(depth_attention_block(xb, db, *args[2:]))
    refb = _reference(xb.astype(jnp.float32), db.astype(jnp.float32),
                      *args[2:])
    assert outb.dtype == jnp.bfloat16
    errb = float(jnp.max(jnp.abs(outb.astype(jnp.float32) - refb)))
    assert errb < 3e-2, f"bf16 max err {errb}"

    # 3) Non-aligned shapes exercise the padding/masking path
    #    (HW = 35 -> padded to 128 cols, B*C = 3 -> padded to 8 rows).
    args2 = make_inputs(1, 3, 5, 7, 8, jax.random.PRNGKey(1))
    out2 = jax.block_until_ready(depth_attention_block(*args2))
    ref2 = _reference(*args2)
    err2 = float(jnp.max(jnp.abs(out2 - ref2)))
    assert jnp.allclose(out2, ref2, atol=2e-5, rtol=2e-5), \
        f"padded max err {err2}"

    print("KERNEL_OK")
</pallas_src>

<mosaic_0001>
module attributes {stable_mosaic.version = 11 : i64} {
  func.func @_pool_kernel(%arg0: i32, %arg1: i32, %arg2: i32, %arg3: memref<1x4x256xf32, #tpu.memory_space<vmem>>, %arg4: memref<4x1xf32, #tpu.memory_space<vmem>>, %arg5: memref<1x1x4x1xf32, #tpu.memory_space<vmem>>, %arg6: memref<1x1x1x1xf32, #tpu.memory_space<vmem>>, %arg7: memref<1x1x1x1xf32, #tpu.memory_space<vmem>>, %arg8: memref<1x256xf32, #tpu.memory_space<vmem>>, %arg9: memref<1x256xf32, #tpu.memory_space<vmem>>, %arg10: memref<4x256xf32, #tpu.memory_space<vmem>>) attributes {dimension_semantics = [#tpu.dimension_semantics<parallel>, #tpu.dimension_semantics<parallel>, #tpu.dimension_semantics<arbitrary>], iteration_bounds = array<i64: 2, 1, 1>, scalar_prefetch = 0 : i64, scratch_operands = 3 : i64, tpu.core_type = #tpu.core_type<tc>, window_params = [{transform_indices = @transform_0, window_bounds = array<i64: 1, 4, 256>}, {pipeline_mode = #tpu.pipeline_mode<synchronous>, transform_indices = @transform_1, window_bounds = array<i64: 4, 1>}, {transform_indices = @transform_2, window_bounds = array<i64: 1, 1, 4, 1>}, {transform_indices = @transform_3, window_bounds = array<i64: 1, 1, 1, 1>}, {transform_indices = @transform_4, window_bounds = array<i64: 1, 1, 1, 1>}]} {
    %c0_i32 = arith.constant 0 : i32
    %0 = arith.cmpi eq, %arg2, %c0_i32 : i32
    %1 = arith.extui %0 : i1 to i32
    %c0_i32_0 = arith.constant 0 : i32
    %2 = arith.cmpi ne, %1, %c0_i32_0 : i32
    scf.if %2 {
      %cst_19 = arith.constant -1.000000e+30 : f32
      %31 = vector.broadcast %cst_19 : f32 to vector<1x256xf32>
      %c0_20 = arith.constant 0 : index
      %c0_21 = arith.constant 0 : index
      %32 = vector.load %arg8[%c0_20, %c0_21] : memref<1x256xf32, #tpu.memory_space<vmem>>, vector<1x256xf32>
      tpu.vector_store %arg8[%c0_20, %c0_21], %31 {strides = array<i32>} : memref<1x256xf32, #tpu.memory_space<vmem>>, vector<1x256xf32>,
      %cst_22 = arith.constant 0.000000e+00 : f32
      %33 = vector.broadcast %cst_22 : f32 to vector<1x256xf32>
      %c0_23 = arith.constant 0 : index
      %c0_24 = arith.constant 0 : index
      %34 = vector.load %arg9[%c0_23, %c0_24] : memref<1x256xf32, #tpu.memory_space<vmem>>, vector<1x256xf32>
      tpu.vector_store %arg9[%c0_23, %c0_24], %33 {strides = array<i32>} : memref<1x256xf32, #tpu.memory_space<vmem>>, vector<1x256xf32>,
      %cst_25 = arith.constant 0.000000e+00 : f32
      %35 = vector.broadcast %cst_25 : f32 to vector<4x256xf32>
      %c0_26 = arith.constant 0 : index
      %c0_27 = arith.constant 0 : index
      %36 = vector.load %arg10[%c0_26, %c0_27] : memref<4x256xf32, #tpu.memory_space<vmem>>, vector<4x256xf32>
      tpu.vector_store %arg10[%c0_26, %c0_27], %35 {strides = array<i32>} : memref<4x256xf32, #tpu.memory_space<vmem>>, vector<4x256xf32>,
    } else {
    }
    %c0 = arith.constant 0 : index
    %c0_1 = arith.constant 0 : index
    %c0_2 = arith.constant 0 : index
    %3 = vector.load %arg3[%c0, %c0_1, %c0_2] : memref<1x4x256xf32, #tpu.memory_space<vmem>>, vector<1x4x256xf32>
    %4 = vector.shape_cast %3 : vector<1x4x256xf32> to vector<4x256xf32>
    %c0_3 = arith.constant 0 : index
    %c0_4 = arith.constant 0 : index
    %5 = vector.load %arg4[%c0_3, %c0_4] : memref<4x1xf32, #tpu.memory_space<vmem>>, vector<4x1xf32>
    %6 = vector.broadcast %5 : vector<4x1xf32> to vector<4x256xf32>
    %7 = arith.mulf %4, %6 : vector<4x256xf32>
    %cst = arith.constant dense<0.000000e+00> : vector<256xf32>
    %8 = vector.multi_reduction <add>, %7, %cst [0] : vector<4x256xf32> to vector<256xf32>
    %9 = vector.shape_cast %8 : vector<256xf32> to vector<1x256xf32>
    %c0_5 = arith.constant 0 : index
    %c0_6 = arith.constant 0 : index
    %10 = vector.load %arg8[%c0_5, %c0_6] : memref<1x256xf32, #tpu.memory_space<vmem>>, vector<1x256xf32>
    %11 = arith.maximumf %10, %9 : vector<1x256xf32>
    %12 = arith.subf %10, %11 : vector<1x256xf32>
    %13 = math.exp %12 : vector<1x256xf32>
    %14 = arith.subf %9, %11 : vector<1x256xf32>
    %15 = math.exp %14 : vector<1x256xf32>
    %c0_7 = arith.constant 0 : index
    %c0_8 = arith.constant 0 : index
    %16 = vector.load %arg9[%c0_7, %c0_8] : memref<1x256xf32, #tpu.memory_space<vmem>>, vector<1x256xf32>
    %17 = arith.mulf %13, %16 : vector<1x256xf32>
    %18 = arith.addf %17, %15 : vector<1x256xf32>
    %c0_9 = arith.constant 0 : index
    %c0_10 = arith.constant 0 : index
    %19 = vector.load %arg9[%c0_9, %c0_10] : memref<1x256xf32, #tpu.memory_space<vmem>>, vector<1x256xf32>
    tpu.vector_store %arg9[%c0_9, %c0_10], %18 {strides = array<i32>} : memref<1x256xf32, #tpu.memory_space<vmem>>, vector<1x256xf32>,
    %c0_11 = arith.constant 0 : index
    %c0_12 = arith.constant 0 : index
    %20 = vector.load %arg10[%c0_11, %c0_12] : memref<4x256xf32, #tpu.memory_space<vmem>>, vector<4x256xf32>
    %21 = vector.broadcast %13 : vector<1x256xf32> to vector<4x256xf32>
    %22 = arith.mulf %21, %20 : vector<4x256xf32>
    %23 = vector.broadcast %15 : vector<1x256xf32> to vector<4x256xf32>
    %24 = arith.mulf %4, %23 : vector<4x256xf32>
    %25 = arith.addf %22, %24 : vector<4x256xf32>
    %c0_13 = arith.constant 0 : index
    %c0_14 = arith.constant 0 : index
    %26 = vector.load %arg10[%c0_13, %c0_14] : memref<4x256xf32, #tpu.memory_space<vmem>>, vector<4x256xf32>
    tpu.vector_store %arg10[%c0_13, %c0_14], %25 {strides = array<i32>} : memref<4x256xf32, #tpu.memory_space<vmem>>, vector<4x256xf32>,
    %c0_15 = arith.constant 0 : index
    %c0_16 = arith.constant 0 : index
    %27 = vector.load %arg8[%c0_15, %c0_16] : memref<1x256xf32, #tpu.memory_space<vmem>>, vector<1x256xf32>
    tpu.vector_store %arg8[%c0_15, %c0_16], %11 {strides = array<i32>} : memref<1x256xf32, #tpu.memory_space<vmem>>, vector<1x256xf32>,
    %c0_i32_17 = arith.constant 0 : i32
    %28 = arith.cmpi eq, %arg2, %c0_i32_17 : i32
    %29 = arith.extui %28 : i1 to i32
    %c0_i32_18 = arith.constant 0 : i32
    %30 = arith.cmpi ne, %29, %c0_i32_18 : i32
    scf.if %30 {
      %c0_19 = arith.constant 0 : index
      %c0_20 = arith.constant 0 : index
      %31 = vector.load %arg8[%c0_19, %c0_20] : memref<1x256xf32, #tpu.memory_space<vmem>>, vector<1x256xf32>
      %cst_21 = arith.constant dense<0xFF800000> : vector<1xf32>
      %32 = vector.multi_reduction <maximumf>, %31, %cst_21 [1] : vector<1x256xf32> to vector<1xf32>
      %33 = vector.shape_cast %32 : vector<1xf32> to vector<1x1xf32>
      %34 = vector.broadcast %33 : vector<1x1xf32> to vector<1x256xf32>
      %35 = arith.subf %31, %34 : vector<1x256xf32>
      %36 = math.exp %35 : vector<1x256xf32>
      %c0_22 = arith.constant 0 : index
      %c0_23 = arith.constant 0 : index
      %37 = vector.load %arg9[%c0_22, %c0_23] : memref<1x256xf32, #tpu.memory_space<vmem>>, vector<1x256xf32>
      %38 = arith.mulf %37, %36 : vector<1x256xf32>
      %cst_24 = arith.constant dense<0.000000e+00> : vector<1xf32>
      %39 = vector.multi_reduction <add>, %38, %cst_24 [1] : vector<1x256xf32> to vector<1xf32>
      %40 = vector.shape_cast %39 : vector<1xf32> to vector<1x1xf32>
      %c0_25 = arith.constant 0 : index
      %c0_26 = arith.constant 0 : index
      %c0_27 = arith.constant 0 : index
      %c0_28 = arith.constant 0 : index
      %41 = vector.load %arg6[%c0_25, %c0_26, %c0_27, %c0_28] : memref<1x1x1x1xf32, #tpu.memory_space<vmem>>, vector<1x1x1x1xf32>
      %42 = vector.shape_cast %41 : vector<1x1x1x1xf32> to vector<1x1xf32>
      %43 = vector.shape_cast %40 : vector<1x1xf32> to vector<1x1x1x1xf32>
      tpu.vector_store %arg6[%c0_25, %c0_26, %c0_27, %c0_28], %43 {strides = array<i32>} : memref<1x1x1x1xf32, #tpu.memory_space<vmem>>, vector<1x1x1x1xf32>,
      %c0_29 = arith.constant 0 : index
      %c0_30 = arith.constant 0 : index
      %44 = vector.load %arg10[%c0_29, %c0_30] : memref<4x256xf32, #tpu.memory_space<vmem>>, vector<4x256xf32>
      %45 = vector.broadcast %36 : vector<1x256xf32> to vector<4x256xf32>
      %46 = arith.mulf %44, %45 : vector<4x256xf32>
      %cst_31 = arith.constant dense<0.000000e+00> : vector<4xf32>
      %47 = vector.multi_reduction <add>, %46, %cst_31 [1] : vector<4x256xf32> to vector<4xf32>
      %48 = vector.shape_cast %47 : vector<4xf32> to vector<4x1xf32>
      %c0_32 = arith.constant 0 : index
      %c0_33 = arith.constant 0 : index
      %c0_34 = arith.constant 0 : index
      %c0_35 = arith.constant 0 : index
      %49 = vector.load %arg5[%c0_32, %c0_33, %c0_34, %c0_35] : memref<1x1x4x1xf32, #tpu.memory_space<vmem>>, vector<1x1x4x1xf32>
      %50 = vector.shape_cast %49 : vector<1x1x4x1xf32> to vector<4x1xf32>
      %51 = vector.shape_cast %48 : vector<4x1xf32> to vector<1x1x4x1xf32>
      tpu.vector_store %arg5[%c0_32, %c0_33, %c0_34, %c0_35], %51 {strides = array<i32>} : memref<1x1x4x1xf32, #tpu.memory_space<vmem>>, vector<1x1x4x1xf32>,
      %c0_36 = arith.constant 0 : index
      %c0_37 = arith.constant 0 : index
      %c0_38 = arith.constant 0 : index
      %c0_39 = arith.constant 0 : index
      %52 = vector.load %arg7[%c0_36, %c0_37, %c0_38, %c0_39] : memref<1x1x1x1xf32, #tpu.memory_space<vmem>>, vector<1x1x1x1xf32>
      %53 = vector.shape_cast %52 : vector<1x1x1x1xf32> to vector<1x1xf32>
      %54 = vector.shape_cast %33 : vector<1x1xf32> to vector<1x1x1x1xf32>
      tpu.vector_store %arg7[%c0_36, %c0_37, %c0_38, %c0_39], %54 {strides = array<i32>} : memref<1x1x1x1xf32, #tpu.memory_space<vmem>>, vector<1x1x1x1xf32>,
    } else {
    }
    return
  }
  func.func @transform_0(%arg0: i32, %arg1: i32, %arg2: i32) -> (i32, i32, i32) {
    %c1_i32 = arith.constant 1 : i32
    %0 = arith.muli %arg1, %c1_i32 : i32
    %1 = arith.addi %0, %arg2 : i32
    %c0_i32 = arith.constant 0 : i32
    %c0_i32_0 = arith.constant 0 : i32
    return %arg0, %c0_i32, %1 : i32, i32, i32
  }
  func.func @transform_1(%arg0: i32, %arg1: i32, %arg2: i32) -> (i32, i32) {
    %c0_i32 = arith.constant 0 : i32
    %c0_i32_0 = arith.constant 0 : i32
    %c0_i32_1 = arith.constant 0 : i32
    return %c0_i32, %c0_i32_0 : i32, i32
  }
  func.func @transform_2(%arg0: i32, %arg1: i32, %arg2: i32) -> (i32, i32, i32, i32) {
    %c0_i32 = arith.constant 0 : i32
    %c0_i32_0 = arith.constant 0 : i32
    %c0_i32_1 = arith.constant 0 : i32
    return %arg0, %arg1, %c0_i32, %c0_i32_0 : i32, i32, i32, i32
  }
  func.func @transform_3(%arg0: i32, %arg1: i32, %arg2: i32) -> (i32, i32, i32, i32) {
    %c0_i32 = arith.constant 0 : i32
    %c0_i32_0 = arith.constant 0 : i32
    %c0_i32_1 = arith.constant 0 : i32
    return %arg0, %arg1, %c0_i32, %c0_i32_0 : i32, i32, i32, i32
  }
  func.func @transform_4(%arg0: i32, %arg1: i32, %arg2: i32) -> (i32, i32, i32, i32) {
    %c0_i32 = arith.constant 0 : i32
    %c0_i32_0 = arith.constant 0 : i32
    %c0_i32_1 = arith.constant 0 : i32
    return %arg0, %arg1, %c0_i32, %c0_i32_0 : i32, i32, i32, i32
  }
}

</mosaic_0001>

<bundles_post_ra>
// kernel: tpu_custom_call.1
= control target key start
LH: loop header
LB: loop body
LE: loop exit
PB: predicated region body
PF: predicated region fallthrough
CT: control target
= control target key end

     0   :  { %10 = vsyncpa [#allocation6], 0  ;;  %s1018_s0 = inlined_call_operand.hbm [shape: f32[2,4,256], index: 0, kind: input, shape index: {}]   ;;  %s1019_s1 = inlined_call_operand.vmem [shape: f32[4,1], index: 1, kind: input, shape index: {}]   ;;  %s1020_s2 = inlined_call_operand.vmem [shape: f32[2,1,4,1], index: 2, kind: output, shape index: {0}]   ;;  %s1021_s3 = inlined_call_operand.vmem [shape: f32[2,1,1,1], index: 3, kind: output, shape index: {1}]   ;;  %s1022_s4 = inlined_call_operand.vmem [shape: f32[2,1,1,1], index: 4, kind: output, shape index: {2}]  }
   0x1   :  { %12 = vsyncpa [#allocation6 + $0x1], 0  ;;  %s861_s15 = smov 0   ;;  %s863_s16 = smov 0  }
   0x2   :  { %s865_s17 = smov 0   ;;  %s867_s18 = smov 0  }
   0x3   :  { %s869_s19 = smov 0   ;;  %s871_s20 = smov 0  }
   0x4 LB: > { %s668_s21 = sadd.s32 4294967295, %s828_s20   ;;  %s37_s22 = sadd.s32 1, %s824_s19  ;;  %s828_s20 = sphi %s871_s20, %s18_s20   ;;  %s824_s19 = sphi %s869_s19, %s1032_s19   ;;  %s820_s18 = sphi %s867_s18, %s1031_s18   ;;  %s816_s17 = sphi %s865_s17, %s1030_s17   ;;  %s812_s16 = sphi %s863_s16, %s1029_s16   ;;  %s808_s15 = sphi %s861_s15, %s1028_s15  }
   0x5   : > { %p39_p0 = scmp.ge.s32.totalorder %s37_s22, 2  ;;  %s48_s23 = sadd.s32 1, %s816_s17 }
   0x6   : > { %p55_p1 = scmp.ne.s32.totalorder %s816_s17, %s812_s16  ;;  %p56_p2 = scmp.eq.s32.totalorder %s828_s20, 0 }
   0x7   : > { %s1034_s22 = smov (%p39_p0, %s37_s22), 0  ;;  %p61_p4 = scmp.ne.s32.totalorder %s812_s16, %s808_s15 }
   0x8   : > { %p897_p3 = por %p56_p2, %p55_p1  ;;  %s43_s25 = ssub.s32 %s824_s19, %s1034_s22 }
   0x9   : > { %p62_p5 = scmp.eq.s32.totalorder %s668_s21, 0  ;;  %p46_p6 = scmp.eq.s32.totalorder %s43_s25, 0 }
   0xa   : > { %p687_p8 = scmp.lt.s32.totalorder %s828_s20, 2  ;;  %s193_s28 = sand.u32 1, %s816_s17  }
   0xb   : > { %p904_p7 = por %p62_p5, %p61_p4  ;;  %s680_s29 = sshll.u32 %s824_s19, 7 }
   0xc   : > { %s910_s27 = scalar_select %p46_p6, %s816_s17, %s48_s23  }
   0xd   : > { %s672_s30 = sshll.u32 %s193_s28, 3  ;;  %s206_s7 = scalar_lea.hbm %s1018_s0, %s680_s29 }
   0xe   : > { %s197_s8 = scalar_lea.vmem [#allocation5], %s672_s30  ;;  %p919_p9 = pnand %p687_p8, %p897_p3 }
   0xf   : > { %s208_s9 = sshll.u32 %s197_s8, 4  ;;  %p675_p10 = scmp.ge.s32.totalorder %s828_s20, 1  ;;  %s209_s9 = int_to_ptr.vmem [resolvable:$true] %s208_s9 }
  0x10   : > { %p213_p11 = scmp.lt.s32.totalorder %s828_s20, 3  ;;  %s194_s11 = scalar_lea.sflag [#allocation6], %s193_s28 }
  0x11   : > { %p752_p12 = pneg %p919_p9  ;;  %s763_s12 = scalar_lea.vmem %s209_s9, 128 }
  0x12   : > { %p764_p13 = scmp.ne.s32.totalorder %s209_s9, %s763_s12  ;;  %s830_s13 = smov [#allocation5]  }
  0x13   : > { %s768_s14 = sshll.u32 %s830_s13, 4  ;;  %s769_s14 = int_to_ptr.vmem [resolvable:$false] %s768_s14 }
  0x14   : > { %p766_p0 = pnand %p764_p13, %p752_p12  ;;  %s770_s15 = scalar_lea.vmem %s769_s14, 256 }
  0x15   : > { %p771_p2 = scmp.lt.s32.totalorder %s209_s9, %s769_s14  ;;  %p772_p3 = scmp.lt.s32.totalorder %s770_s15, %s763_s12 }
  0x16   : > { %p767_p1 = pneg %p766_p0 }
  0x17   : > { %p773_p4 = por %p772_p3, %p771_p2 }
  0x19   : > { %p774_p5 = pnand %p773_p4, %p767_p1 }
  0x1b   : > { %777 = shalt.err (!%p774_p5)
}
  0x1c   : > { %686 = dma.hbm_to_vmem [thread:$0]  (!%p919_p9), %s206_s7, 128, %s209_s9, %s194_s11  }
  0x1d   : > { %p214_p6 = pnand %p675_p10, %p213_p11 }
  0x1e   : > { %s219_s21 = sand.u32 (!%p214_p6), 1, %s812_s16  }
  0x1f   : > { %217 = sbr.rel (%p214_p6) target bundleno = 511 (0x1ff), region = 28  ;;  %s676_s23 = sshll.u32 (!%p214_p6), %s219_s21, 3 }
  0x20   : > { %s220_s24 = scalar_lea.sflag (!%p214_p6), [#allocation6], %s219_s21  ;;  %s223_s25 = scalar_lea.vmem (!%p214_p6), [#allocation5], %s676_s23 }
  0x24   : > { %803 = dma.done.wait (%p904_p7), %s220_s24, 128  }
  0x25   : > { %805 = vsyncadd (%p904_p7), %s220_s24, 4294967168  ;;  %v287_v0 = vlaneseq  ;;  %v831_v1 = vmov 0   ;;  %v832_v3 = vmov -1e+30   ;;  %v833_v4 = vmov 0.0   ;;  %v949_v12 = vld [vmem:[%s223_s25] sm:$0xff] }
  0x26   : > { %741 = vset.pattern.permute.xlu0 %v831_v1  ;;  %v295_v5 = vld [vmem:[%s1019_s1] sm:$0xf]  ;;  %v834_v6 = vmov 839922192   ;;  %vm312_vm1 = vcmask 1043456   ;;  %vm449_vm2 = vcmask 1040384   ;;  %v406_v55 = vcombine.high %v833_v4, %v833_v4 }
  0x27   : > { %vm938_vm0 = vcmp.lt.s32.totalorder %v287_v0, 256  ;;  %298 = vperm.xlu0 %741, %v295_v5   ;;  %v301_v7 = vunpack.c.l.s4 %v834_v6  ;;  %v304_v9 = vshrl.u32 %v287_v0, 7  ;;  %v835_v21 = vmov 1966171168   ;;  %p264_p7 = scmp.lt.s32.totalorder %s820_s18, 1 }
  0x28   : > { %291 = vst.msk [vmem:[#allocation2] sm:$0x3] %vm938_vm0, %v832_v3  ;;  %292 = vst.msk [vmem:[#allocation3] sm:$0x3] %vm938_vm0, %v833_v4  ;;  %v332_v22 = vunpack.c.l.s4 %v835_v21  ;;  %vm482_vm3 = vcmask 0   ;;  %vm505_vm4 = vcmask 3072  }
  0x29   : > { %v302_v8 = vunpack.c.0.s8 %v301_v7  ;;  %v954_v37 = vsub.s32 0, %v304_v9  ;;  %v956_v38 = vsub.s32 1, %v304_v9  ;;  %s1036_s18 = smov (!%p264_p7, %s820_s18), 1 }
  0x2a   : > { %v333_v27 = vunpack.c.0.s8 %v332_v22  ;;  %s282_s5 = scalar_lea.vmem %s1022_s4, %s1036_s18  ;;  %s276_s8 = scalar_lea.vmem %s1021_s3, %s1036_s18 }
  0x2b   : > { %v305_v10 = vsub.s32 %v302_v8, %v304_v9  ;;  %s677_s9 = sshll.u32 %s1036_s18, 2 }
  0x2c   : > { %v336_v31 = vsub.s32 %v333_v27, %v304_v9  ;;  %s270_s12 = scalar_lea.vmem %s1020_s2, %s677_s9 }
  0x2f   : > { %v327_v36 = vld [vmem:[#allocation2] sm:$0x3]  ;;  %v367_v1 = vld [vmem:[#allocation3] sm:$0x3] }
  0xa2   : > { %v299_v11 = vpop.permute.xlu0 %298 }
  0xa3   : > { %v306_v13 = vrot.slane %v299_v11, %v305_v10 }
  0xa5   : > { %v308_v14 = vmul.f32 %v306_v13, %v949_v12 }
  0xa7   : > { %v310_v15 = vcombine.high %v308_v14, %v308_v14  ;;  %v313_v16 = vsel %vm312_vm1, %v308_v14, 0.0 }
  0xa8   : > { %v314_v17 = vrot.slane %v313_v16, 4 }
  0xa9   : > { %v320_v18 = vsel %vm312_vm1, %v310_v15, 0.0 }
  0xaa   : > { %v315_v19 = vadd.f32 %v314_v17, %v313_v16  ;;  %v321_v20 = vrot.slane %v320_v18, 4 }
  0xac   : > { %v316_v23 = vrot.slane %v315_v19, 2  ;;  %v322_v24 = vadd.f32 %v321_v20, %v320_v18 }
  0xae   : > { %v317_v25 = vadd.f32 %v316_v23, %v315_v19  ;;  %v323_v26 = vrot.slane %v322_v24, 2 }
  0xb0   : > { %v318_v28 = vrot.slane %v317_v25, 1  ;;  %v324_v29 = vadd.f32 %v323_v26, %v322_v24 }
  0xb2   : > { %v325_v30 = vrot.slane %v324_v29, 1  ;;  %v319_v32 = vadd.f32 %v318_v28, %v317_v25 }
  0xb4   : > { %v326_v33 = vadd.f32 %v325_v30, %v324_v29 }
  0xb6   : > { %v330_v34 = vcombine.low %v319_v32, %v326_v33 }
  0xb8   : > { %v337_v35 = vrot.slane %v330_v34, %v336_v31 }
  0xba   : > { %v344_v39 = vrot.slane %v337_v35, %v336_v31 }
  0xbc   : > { %v346_v40 = vmax.f32 %v327_v36, %v344_v39 }
  0xbe   : > { %v347_v41 = vsub.f32 %v327_v36, %v346_v40  ;;  %v354_v42 = vrot.slane %v346_v40, %v954_v37  ;;  %v358_v43 = vrot.slane %v346_v40, %v956_v38  ;;  %433 = vst.msk [vmem:[#allocation2] sm:$0x3] %vm938_vm0, %v346_v40 }
  0xc0   : > { %v348_v44 = vmul.f32 1.442695, %v347_v41  ;;  %v361_v45 = vsub.f32 %v319_v32, %v354_v42  ;;  %v362_v46 = vsub.f32 %v326_v33, %v358_v43 }
  0xc2   : > { %742 = vpow2.f32 %v348_v44  ;;  %v363_v47 = vmul.f32 1.442695, %v361_v45  ;;  %v365_v48 = vmul.f32 1.442695, %v362_v46 }
  0xc4   : > { %744 = vpow2.f32 %v363_v47 }
  0xc5   : > { %746 = vpow2.f32 %v365_v48  ;;  %v437_v49 = vld [vmem:[#allocation2] sm:$0x3] }
  0xc6   : > { %v442_v50 = vrot.slane %v437_v49, %v954_v37  ;;  %v446_v51 = vrot.slane %v437_v49, %v956_v38 }
  0xc8   : > { %v450_v52 = vsel %vm449_vm2, %v442_v50, -inf  ;;  %v451_v53 = vsel %vm449_vm2, %v446_v51, -inf }
  0xc9   : > { %v452_v54 = vmax.f32 %v450_v52, %v451_v53 }
  0xcb   : > { %453 = vmax.xlane.f32.xlu0 %v452_v54 }
  0xcf   : > { %v743_v56 = vpop.eup %742 }
  0xd0   : > { %v402_v57 = vrot.slane %v743_v56, %v956_v38  ;;  %v398_v63 = vrot.slane %v743_v56, %v954_v37  ;;  %v368_v6 = vmul.f32 %v743_v56, %v367_v1 }
  0xd1   : > { %v745_v58 = vpop.eup %744 }
  0xd2   : > { %v747_v59 = vpop.eup %746  ;;  %v413_v60 = vrot.slane %v745_v58, %v954_v37  ;;  %v409_v61 = vmul.f32 %v406_v55, %v402_v57  ;;  %v408_v7 = vmul.f32 0.0, %v398_v63 }
  0xd3   : > { %v371_v62 = vcombine.low %v745_v58, %v747_v59  ;;  %v417_v0 = vrot.slane %v747_v59, %v954_v37 }
  0xd5   : > { %v378_v3 = vrot.slane %v371_v62, %v336_v31  ;;  %v420_v5 = vcombine.low %v413_v60, %v417_v0 }
  0xd7   : > { %v385_v4 = vrot.slane %v378_v3, %v336_v31  ;;  %v422_v8 = vmul.f32 %v420_v5, %v949_v12 }
  0xd9   : > { %v387_v9 = vadd.f32 %v385_v4, %v368_v6  ;;  %v424_v10 = vcombine.high %v422_v8, %v422_v8  ;;  %v426_v11 = vadd.f32 %v422_v8, %v408_v7 }
  0xdb   : > { %392 = vst.msk [vmem:[#allocation3] sm:$0x3] %vm938_vm0, %v387_v9  ;;  %v427_v13 = vadd.f32 %v424_v10, %v409_v61 }
  0xdd   : > { %v430_v14 = vcombine.low %v426_v11, %v427_v13 }
  0xe2   : > { %v464_v18 = vld [vmem:[#allocation3] sm:$0x3] }
 0x154   : > { %v454_v15 = vpop.xlane.xlu0 %453 }
 0x155   : > { %v459_v12 = vrot.slane %v454_v15, %v954_v37  ;;  %507 = vst.msk [vmem:[%s282_s5] sm:$0x1] %vm482_vm3, %v454_v15 }
 0x157   : > { %v461_v16 = vsub.f32 %v437_v49, %v459_v12 }
 0x159   : > { %v462_v17 = vmul.f32 1.442695, %v461_v16 }
 0x15b   : > { %748 = vpow2.f32 %v462_v17 }
 0x168   : > { %v749_v2 = vpop.eup %748 }
 0x169   : > { %v465_v19 = vmul.f32 %v749_v2, %v464_v18  ;;  %v489_v20 = vrot.slane %v749_v2, %v954_v37  ;;  %v493_v21 = vrot.slane %v749_v2, %v956_v38 }
 0x16b   : > { %v470_v22 = vrot.slane %v465_v19, %v954_v37  ;;  %v474_v23 = vrot.slane %v465_v19, %v956_v38  ;;  %v494_v24 = vcombine.low %v489_v20, %v493_v21 }
 0x16d   : > { %v477_v25 = vsel %vm449_vm2, %v470_v22, 0.0  ;;  %v478_v26 = vsel %vm449_vm2, %v474_v23, 0.0  ;;  %v496_v27 = vmul.f32 %v494_v24, %v430_v14 }
 0x16e   : > { %v479_v28 = vadd.f32 %v478_v26, %v477_v25 }
 0x16f   : > { %v498_v29 = vcombine.high %v496_v27, %v496_v27  ;;  %v500_v30 = vsel %vm312_vm1, %v496_v27, 0.0 }
 0x170   : > { %480 = vadd.xlane.f32.xlu1 %v479_v28 }
 0x171   : > { %v501_v31 = vsel %vm312_vm1, %v498_v29, 0.0 }
 0x172   : > { %v502_v32 = vadd.f32 %v501_v31, %v500_v30 }
 0x174   : > { %503 = vadd.xlane.f32.xlu1 %v502_v32 }
 0x1f9   : > { %v481_v33 = vpop.xlane.xlu1 %480 }
 0x1fa   : > { %483 = vst.msk [vmem:[%s276_s8] sm:$0x1] %vm482_vm3, %v481_v33 }
 0x1fd   : > { %v504_v34 = vpop.xlane.xlu1 %503 }
 0x1fe   : > { %506 = vst.msk [vmem:[%s270_s12] sm:$0xf] %vm505_vm4, %v504_v34 }
 0x1ff PF: > { %s18_s20 = sadd.s32 1, %s828_s20   ;;  %s1028_s15 = smov %s812_s16 }
 0x200   : > { %p15_p8 = scmp.ge.s32.totalorder %s18_s20, 4   ;;  %s1029_s16 = smov %s816_s17 }
 0x201   : > { %s1030_s17 = smov %s910_s27  ;;  %s1031_s18 = smov %s824_s19 }
 0x202   : > { %s1032_s19 = smov %s1034_s22  ;;  %17 = sbr.rel (!%p15_p8) target bundleno = 4 (0x4), region = 100 }
 0x207   :  { %569 = vsyncpa [#allocation6], 1 }
 0x208   :  { %571 = vsyncpa [#allocation6 + $0x1], 1 }

</bundles_post_ra>
